<compile_context>
chip_gen: v7x
topology: tpu7x:2x2x1
jax: 0.10.0
libtpu: 0.0.40
codegen_flags: <defaults>
</compile_context>

<pallas_src>
import jax
import jax.numpy as jnp
from jax.experimental import pallas as pl
from jax.experimental.pallas import tpu as pltpu


def _dist2cycle_kernel(x_ref, w_ref, b_ref, o_ref):
    # x_ref : (tm, C)  VMEM  node-feature tile (last dim == full feature dim)
    # w_ref : (2, C)   VMEM  rows = [w0 - w1, w1 - w0]
    # b_ref : (2, 1)   VMEM  rows = [b0 - b1, b1 - b0]
    # o_ref : (2, tm)  VMEM  rows = [p0, p1]  (lane-dense along nodes)
    #
    # softmax([z0, z1]) == [sigmoid(z0 - z1), sigmoid(z1 - z0)], so one
    # contraction against the signed weight differences gives both rows.
    logits = jax.lax.dot_general(
        w_ref[...], x_ref[...],
        dimension_numbers=(((1,), (1,)), ((), ())),   # contract feature axes
        preferred_element_type=jnp.float32)            # (2, tm)
    o_ref[...] = jax.nn.sigmoid(logits + b_ref[...]).astype(o_ref.dtype)


def _round_up(x, m):
    return -(-x // m) * m


def _pick_tm(n_nodes, channels, *, vmem_budget_bytes=10 * 1024 * 1024,
             cap=8192, target_tiles=4):
    """Largest row tile that (a) fits the VMEM budget counting *lane-padded*
    double-buffered input and output blocks, (b) is <= cap, and (c) leaves at
    least `target_tiles` blocks on the parallel grid axis so v7x's two
    TensorCores both get work.  Tiny problems run as a single full block."""
    if n_nodes <= 256:
        return n_nodes                      # block == full array, grid == 1
    in_bytes_per_node = _round_up(channels, 128) * 4    # lane-padded f32 row
    out_bytes_per_node = 8 * 4                           # 2->8 sublane-padded col
    per_node = 2 * (in_bytes_per_node + out_bytes_per_node)   # double-buffered
    tm_vmem = max(128, (vmem_budget_bytes // per_node) // 128 * 128)
    tm_balance = _round_up(-(-n_nodes // target_tiles), 128)
    return max(128, min(cap, tm_vmem, tm_balance))


def dist2cycle_forward(x_1e, Linv, adjacency, weight, bias, *, tm=None):
    """Pallas implementation of Dist2Cycle.forward.

    x_1e      : (n_nodes, channels) float32
    Linv      : unused (kept for signature parity with the torch module)
    adjacency : unused (kept for signature parity with the torch module)
    weight    : (channels, 2) float32  -- NOTE: torch nn.Linear.weight is
                (2, channels); pass it transposed.
    bias      : (2,) float32
    returns   : (n_nodes, 2) float32 softmax probabilities
    """
    del Linv, adjacency  # not used by the reference forward pass
    n_nodes, channels = x_1e.shape
    if weight.shape != (channels, 2):
        raise ValueError(
            f"weight must be (channels, 2)=({channels}, 2) (torch weight "
            f"transposed); got {weight.shape}")
    if tm is None:
        tm = _pick_tm(n_nodes, channels)

    # Signed weight / bias differences: row 0 -> p0, row 1 -> p1.
    w_pm = jnp.stack([weight[:, 0] - weight[:, 1],
                      weight[:, 1] - weight[:, 0]], axis=0).astype(jnp.float32)
    b_pm = jnp.stack([bias[0] - bias[1],
                      bias[1] - bias[0]]).reshape(2, 1).astype(jnp.float32)

    grid = (pl.cdiv(n_nodes, tm),)
    cost = pl.CostEstimate(
        flops=4 * n_nodes * channels,            # 2 classes x C MACs per node
        transcendentals=2 * n_nodes,             # two sigmoids per node
        bytes_accessed=4 * n_nodes * channels + 8 * n_nodes + 8 * channels + 8)

    out_2n = pl.pallas_call(
        _dist2cycle_kernel,
        out_shape=jax.ShapeDtypeStruct((2, n_nodes), jnp.float32),
        grid_spec=pltpu.PrefetchScalarGridSpec(
            num_scalar_prefetch=0,
            grid=grid,
            in_specs=[
                pl.BlockSpec((tm, channels), lambda i: (i, 0)),
                pl.BlockSpec((2, channels), lambda i: (0, 0)),
                pl.BlockSpec((2, 1), lambda i: (0, 0)),
            ],
            out_specs=pl.BlockSpec((2, tm), lambda i: (0, i)),
        ),
        compiler_params=pltpu.CompilerParams(
            dimension_semantics=("parallel",),
            vmem_limit_bytes=32 * 1024 * 1024),
        cost_estimate=cost,
    )(x_1e.astype(jnp.float32), w_pm, b_pm)

    # One cheap XLA op to present the torch layout (n, 2).
    return out_2n.T


if __name__ == "__main__":
    key = jax.random.PRNGKey(0)
    k_x, k_w, k_b, k_l, k_a, k_x2 = jax.random.split(key, 6)

    n_nodes, channels = 64, 16

    x_1e = jax.random.normal(k_x, (n_nodes, channels), dtype=jnp.float32)
    # Linv / adjacency are forward inputs of the torch module but unused.
    Linv = jax.random.normal(k_l, (n_nodes, n_nodes), dtype=jnp.float32)
    adjacency = jax.random.normal(k_a, (n_nodes, n_nodes), dtype=jnp.float32)

    # Deterministic Linear(channels, 2) parameters (uniform like torch default).
    bound = 1.0 / (channels ** 0.5)
    weight = jax.random.uniform(k_w, (channels, 2), dtype=jnp.float32,
                                minval=-bound, maxval=bound)
    bias = jax.random.uniform(k_b, (2,), dtype=jnp.float32,
                              minval=-bound, maxval=bound)

    # --- small single-block case -------------------------------------------
    out = dist2cycle_forward(x_1e, Linv, adjacency, weight, bias)
    out = jax.block_until_ready(out)
    ref = jax.nn.softmax(x_1e @ weight + bias, axis=-1)
    assert out.shape == (n_nodes, 2)
    assert jnp.allclose(out, ref, atol=1e-5, rtol=1e-5)

    # --- ragged node count (block == full array, not a multiple of 8) -------
    n_rag = 37
    out_rag = dist2cycle_forward(x_1e[:n_rag], Linv, adjacency, weight, bias)
    out_rag = jax.block_until_ready(out_rag)
    ref_rag = jax.nn.softmax(x_1e[:n_rag] @ weight + bias, axis=-1)
    assert out_rag.shape == (n_rag, 2)
    assert jnp.allclose(out_rag, ref_rag, atol=1e-5, rtol=1e-5)

    # --- multi-block grid with a ragged final block (no wrapper padding) ----
    n_big = 700
    x_big = jax.random.normal(k_x2, (n_big, channels), dtype=jnp.float32)
    out_big = dist2cycle_forward(x_big, None, None, weight, bias)
    out_big = jax.block_until_ready(out_big)
    ref_big = jax.nn.softmax(x_big @ weight + bias, axis=-1)
    assert out_big.shape == (n_big, 2)
    assert jnp.allclose(out_big, ref_big, atol=1e-5, rtol=1e-5)

    print("KERNEL_OK")
</pallas_src>

<mosaic_0001>
module attributes {stable_mosaic.version = 11 : i64} {
  func.func @_dist2cycle_kernel(%arg0: i32, %arg1: memref<64x16xf32, #tpu.memory_space<vmem>>, %arg2: memref<2x16xf32, #tpu.memory_space<vmem>>, %arg3: memref<2x1xf32, #tpu.memory_space<vmem>>, %arg4: memref<2x64xf32, #tpu.memory_space<vmem>>) attributes {dimension_semantics = [#tpu.dimension_semantics<parallel>], iteration_bounds = array<i64: 1>, scalar_prefetch = 0 : i64, scratch_operands = 0 : i64, tpu.core_type = #tpu.core_type<tc>, window_params = [{transform_indices = @transform_0, window_bounds = array<i64: 64, 16>}, {pipeline_mode = #tpu.pipeline_mode<synchronous>, transform_indices = @transform_1, window_bounds = array<i64: 2, 16>}, {pipeline_mode = #tpu.pipeline_mode<synchronous>, transform_indices = @transform_2, window_bounds = array<i64: 2, 1>}, {transform_indices = @transform_3, window_bounds = array<i64: 2, 64>}]} {
    %c0 = arith.constant 0 : index
    %c0_0 = arith.constant 0 : index
    %0 = vector.load %arg2[%c0, %c0_0] : memref<2x16xf32, #tpu.memory_space<vmem>>, vector<2x16xf32>
    %c0_1 = arith.constant 0 : index
    %c0_2 = arith.constant 0 : index
    %1 = vector.load %arg1[%c0_1, %c0_2] : memref<64x16xf32, #tpu.memory_space<vmem>>, vector<64x16xf32>
    %cst = arith.constant dense<0.000000e+00> : vector<2x64xf32>
    %2 = tpu.matmul %0, %1, %cst {dimension_numbers = #tpu.dot_dimension_numbers<[1], [1], [0], [0], [0, 0, 1, 0], [], []>} : vector<2x16xf32>, vector<64x16xf32>, vector<2x64xf32> -> vector<2x64xf32>
    %c0_3 = arith.constant 0 : index
    %c0_4 = arith.constant 0 : index
    %3 = vector.load %arg3[%c0_3, %c0_4] : memref<2x1xf32, #tpu.memory_space<vmem>>, vector<2x1xf32>
    %4 = vector.broadcast %3 : vector<2x1xf32> to vector<2x64xf32>
    %5 = arith.addf %2, %4 : vector<2x64xf32>
    %6 = arith.negf %5 : vector<2x64xf32>
    %7 = math.exp %6 : vector<2x64xf32>
    %cst_5 = arith.constant 1.000000e+00 : f32
    %8 = vector.broadcast %cst_5 : f32 to vector<2x64xf32>
    %9 = arith.addf %8, %7 : vector<2x64xf32>
    %10 = arith.divf %8, %9 : vector<2x64xf32>
    %c0_6 = arith.constant 0 : index
    %c0_7 = arith.constant 0 : index
    %11 = vector.load %arg4[%c0_6, %c0_7] : memref<2x64xf32, #tpu.memory_space<vmem>>, vector<2x64xf32>
    tpu.vector_store %arg4[%c0_6, %c0_7], %10 {strides = array<i32>} : memref<2x64xf32, #tpu.memory_space<vmem>>, vector<2x64xf32>,
    return
  }
  func.func @transform_0(%arg0: i32) -> (i32, i32) {
    %c0_i32 = arith.constant 0 : i32
    %c0_i32_0 = arith.constant 0 : i32
    return %arg0, %c0_i32 : i32, i32
  }
  func.func @transform_1(%arg0: i32) -> (i32, i32) {
    %c0_i32 = arith.constant 0 : i32
    %c0_i32_0 = arith.constant 0 : i32
    %c0_i32_1 = arith.constant 0 : i32
    return %c0_i32, %c0_i32_0 : i32, i32
  }
  func.func @transform_2(%arg0: i32) -> (i32, i32) {
    %c0_i32 = arith.constant 0 : i32
    %c0_i32_0 = arith.constant 0 : i32
    %c0_i32_1 = arith.constant 0 : i32
    return %c0_i32, %c0_i32_0 : i32, i32
  }
  func.func @transform_3(%arg0: i32) -> (i32, i32) {
    %c0_i32 = arith.constant 0 : i32
    %c0_i32_0 = arith.constant 0 : i32
    return %c0_i32, %arg0 : i32, i32
  }
}

</mosaic_0001>

<bundles_post_ra>
// kernel: tpu_custom_call.1
= control target key start
LH: loop header
LB: loop body
LE: loop exit
PB: predicated region body
PF: predicated region fallthrough
CT: control target
= control target key end

     0   :  { %vm30_vm0 = vcmask 130048   ;;  %v238_v2 = vmov 0.0|0.0   ;;  %vm239_vm2 = vmmov 0   ;;  %v240_v5 = vmov 0.0   ;;  %s320_s0 = inlined_call_operand.vmem [shape: f32[64,16], index: 0, kind: input, shape index: {}]   ;;  %s321_s1 = inlined_call_operand.vmem [shape: f32[2,16], index: 1, kind: input, shape index: {}]   ;;  %s322_s2 = inlined_call_operand.vmem [shape: f32[2,1], index: 2, kind: input, shape index: {}]   ;;  %s323_s3 = inlined_call_operand.hbm [shape: f32[2,64], index: 3, kind: output, shape index: {}]  }
   0x1   :  { %v16_v0 = vld [vmem:[%s320_s0] sm:$0xff]  ;;  %v17_v1 = vld [vmem:[%s320_s0 + $0x8] sm:$0xff]  ;;  %188 = vmatprep.subr.bf16.mxu0 %v238_v2  ;;  %vm271_vm1 = vmpackc.low %vm30_vm0, %vm30_vm0  ;;  %185 = vmatprep.mubr.msk.f32.mxu0 %vm239_vm2, %v240_v5  ;;  %v241_v6 = vmov 0  }
   0x2   :  { %v189_v3 = vpack.c.bf16 %v17_v1, %v16_v0  ;;  %209 = vset.pattern.permute.xlu0 %v241_v6  ;;  %v24_v7 = vld [vmem:[%s322_s2] sm:$0x3] }
   0x4   :  { %191 = vmatpush3.bf16.xpose.msk.msra.mxu0 %vm271_vm1, %v189_v3 }
   0x5   :  { %8 = vsyncpa [#allocation3], 0  ;;  %192 = vmatprep.subr.bf16.mxu0 %v238_v2  ;;  %v18_v8 = vld [vmem:[%s320_s0 + $0x10] sm:$0xff]  ;;  %v19_v9 = vld [vmem:[%s320_s0 + $0x18] sm:$0xff]  ;;  %27 = vperm.xlu0 %209, %v24_v7   ;;  %vm134_vm3 = vcmask 517120  }
   0x6   :  { %v193_v10 = vpack.c.bf16 %v19_v9, %v18_v8  ;;  %v20_v11 = vld [vmem:[%s320_s0 + $0x20] sm:$0xff]  ;;  %v21_v12 = vld [vmem:[%s320_s0 + $0x28] sm:$0xff]  ;;  %v22_v14 = vld [vmem:[%s320_s0 + $0x30] sm:$0xff] }
   0x7   :  { %v197_v13 = vpack.c.bf16 %v21_v12, %v20_v11  ;;  %v23_v15 = vld [vmem:[%s320_s0 + $0x38] sm:$0xff]  ;;  %v15_v17 = vld [vmem:[%s321_s1] sm:$0x3]  ;;  %s242_s0 = smov [#allocation2]  }
   0x8   :  { %v201_v16 = vpack.c.bf16 %v23_v15, %v22_v14  ;;  %s142_s4 = sshll.u32 %s242_s0, 4  ;;  %s143_s4 = int_to_ptr.vmem [resolvable:$true] %s142_s4 }
   0x9   :  { %s214_s5 = scalar_lea.vmem %s143_s4, 32  ;;  %p219_p1 = scmp.lt.s32.totalorder %s143_s4, %s143_s4 }
   0xa   :  { %p215_p0 = scmp.ne.s32.totalorder %s143_s4, %s214_s5  ;;  %p220_p2 = scmp.lt.s32.totalorder %s214_s5, %s214_s5 }
   0xc   :  { %195 = vmatpush3.bf16.xpose.msk.msra.mxu0 %vm271_vm1, %v193_v10  ;;  %p221_p3 = por %p220_p2, %p219_p1 }
   0xd   :  { %196 = vmatprep.subr.bf16.mxu0 %v238_v2 }
   0xe   :  { %p222_p4 = pnand %p221_p3, %p215_p0 }
  0x14   :  { %199 = vmatpush3.bf16.xpose.msk.msra.mxu0 %vm271_vm1, %v197_v13 }
  0x15   :  { %200 = vmatprep.subr.bf16.mxu0 %v238_v2 }
  0x1c   :  { %203 = vmatpush3.bf16.xpose.msk.msra.mxu0 %vm271_vm1, %v201_v16 }
  0x23   :  { %186 = vmatmul.mubr.msk.f32.vlgmr.msra.gmra.mrb[0].mxu0 %vm30_vm0, %v15_v17 }
  0x84   :  { %v28_v18 = vpop.permute.xlu0 %27 }
  0xf6   :  { %v124_v19 = vpop.f32.mrb[0].mxu0 }
  0xf7   :  { %v125_v20 = vadd.f32 %v124_v19, %v28_v18  ;;  %v187_v21 = vpop.f32.mrb[1].mxu0 }
  0xf9   :  { %v159_v22 = vmul.f32 -1.442695, %v125_v20 }
  0xfb   :  { %210 = vpow2.f32 %v159_v22 }
 0x105   :  { %v211_v23 = vpop.eup %210 }
 0x106   :  { %v131_v24 = vadd.f32 1.0, %v211_v23 }
 0x108   :  { %212 = vrcp.f32 %v131_v24 }
 0x112   :  { %v213_v25 = vpop.eup %212 }
 0x113   :  { %135 = vst.msk [vmem:[#allocation2] sm:$0x3] %vm134_vm3, %v213_v25 }
 0x114   :  { %225 = shalt.err (!%p222_p4)
}
 0x115   :  { %s226_s7 = scalar_lea.hbm %s323_s3, 32 }
 0x116   :  { %p227_p5 = scmp.ne.s32.totalorder %s323_s3, %s226_s7  ;;  %p230_p6 = scmp.lt.u32.totalorder %s226_s7, %s323_s3 }
 0x118   :  { %p232_p7 = pnand %p230_p6, %p227_p5 }
 0x11a   :  { %235 = shalt.err (!%p232_p7)
}
 0x11b   :  { %145 = dma.vmem_to_hbm [thread:$0]  %s143_s4, 32, %s323_s3, [#allocation3]  }
 0x11c   :  { %236 = dma.done.wait [#allocation3], 32  }
 0x11d   :  { %237 = vsyncadd [#allocation3], 4294967264 }
 0x11e   :  { %149 = vsyncpa [#allocation3], 1 }

</bundles_post_ra>
